<compile_context>
chip_gen: v7x
topology: tpu7x:2x2x1
jax: 0.10.0
libtpu: 0.0.40
codegen_flags: <defaults>
</compile_context>

<pallas_src>
import jax
import jax.numpy as jnp
from jax.experimental import pallas as pl
from jax.experimental.pallas import tpu as pltpu


def _round_up(x, m):
    return (x + m - 1) // m * m


# --------------------------------------------------------------------------
# Fused kernel: pointwise flow proxy (both directions) + magnitude mean.
# TODO(synk): the real UniMatch flow extractor (Swin attention, correlation,
# 6-step regression refinement, pretrained checkpoint) is an external model
# whose source is not part of this module; it is replaced by a deterministic
# pointwise projection of the concatenated image pair -> 2-channel flow.
# --------------------------------------------------------------------------
def _make_fused_kernel(w, b, C):
    """Bake the proxy weights in as compile-time scalars (pure VPU FMAs)."""
    wc = [[float(w[i, j]) for j in range(2)] for i in range(2 * C)]
    bc = [float(b[0]), float(b[1])]

    def kernel(before_ref, im_ref, after_ref, o_ref):
        bf = before_ref[...]          # (C, TH, WP)  f32, W lane-dense
        cu = im_ref[...]              # (C, TH, WP)
        af = after_ref[...]           # (C, TH, WP)

        fu = jnp.full(o_ref.shape, bc[0], jnp.float32)
        fv = jnp.full(o_ref.shape, bc[1], jnp.float32)
        bu = jnp.full(o_ref.shape, bc[0], jnp.float32)
        bv = jnp.full(o_ref.shape, bc[1], jnp.float32)
        for c in range(C):
            # forward flow  ~ proxy(concat(im,        im_after))
            fu = fu + wc[c][0] * cu[c] + wc[C + c][0] * af[c]
            fv = fv + wc[c][1] * cu[c] + wc[C + c][1] * af[c]
            # backward flow ~ proxy(concat(im_before, im))
            bu = bu + wc[c][0] * bf[c] + wc[C + c][0] * cu[c]
            bv = bv + wc[c][1] * bf[c] + wc[C + c][1] * cu[c]

        mag_f = jnp.sqrt(fu * fu + fv * fv)
        mag_b = jnp.sqrt(bu * bu + bv * bv)
        o_ref[...] = 0.5 * (mag_f + mag_b)     # mean over the two directions

    return kernel


def fused_mean_flow(kernel, im_before, im, im_after):
    """All inputs (H, W, C) f32, already cropped to the common (Huni, Wuni).

    Returns mean flow magnitude, shape (1, 1, H, W) (matches torch output).
    """
    H, W, C = im.shape
    tile_h = min(_round_up(H, 8), 64)          # keep each block ~<2 MiB
    Hp = _round_up(H, tile_h)
    Wp = _round_up(W, 128)                     # lane-dense, unmasked vst/vld

    def prep(x):
        x = jnp.transpose(x.astype(jnp.float32), (2, 0, 1))   # HWC -> CHW
        return jnp.pad(x, ((0, 0), (0, Hp - H), (0, Wp - W)))

    bf, cu, af = prep(im_before), prep(im), prep(im_after)

    img_spec = pl.BlockSpec((C, tile_h, Wp), lambda i: (0, i, 0))

    out = pl.pallas_call(
        kernel,
        out_shape=jax.ShapeDtypeStruct((Hp, Wp), jnp.float32),
        grid=(Hp // tile_h,),
        in_specs=[img_spec, img_spec, img_spec],
        out_specs=pl.BlockSpec((tile_h, Wp), lambda i: (i, 0)),
        compiler_params=pltpu.CompilerParams(
            dimension_semantics=("parallel",)),
    )(bf, cu, af)

    return out[:H, :W].reshape(1, 1, H, W)


# --------------------------------------------------------------------------
# Unimatch.forward equivalent
# --------------------------------------------------------------------------
class UnimatchPallas:
    def __init__(self, key, channels=3, unimatch_multiple=8):
        # deterministic synthetic parameters for the flow-proxy head
        k1, k2 = jax.random.split(key)
        self.w = 0.1 * jax.random.normal(k1, (2 * channels, 2), jnp.float32)
        self.b = 0.01 * jax.random.normal(k2, (2,), jnp.float32)
        self.channels = channels
        # real module uses 128; kept configurable for small synthetic shapes
        self.unimatch_multiple = unimatch_multiple
        self._kernel = _make_fused_kernel(self.w, self.b, channels)

    def __call__(self, im, im_after, im_before):
        # im, im_after, im_before: (H, W, C) float32, HWC like the numpy inputs
        im_after = im_after[3:-3, :, :]
        im_before = im_before[3:-3, :, :]

        Huni, Wuni, _ = im_before.shape

        # The torch module symmetric-pads to a multiple of `unimatch_multiple`
        # and crops the predicted flow back to [:Huni, :Wuni].  The flow proxy
        # is pointwise, so pad-then-crop is the identity on that region; crop
        # the inputs up-front and skip the padded compute entirely.
        # TODO(synk): restore the symmetric-pad path if a non-pointwise
        # (attention-based) extractor is plugged in.
        im_c = im[:Huni, :Wuni]
        im_after_c = im_after[:Huni, :Wuni]
        im_before_c = im_before[:Huni, :Wuni]

        # TODO(synk): np.save of the fp16 flows and the middlebury-color PNG
        # visualisation are host-side file-I/O side effects; not implemented.

        return fused_mean_flow(self._kernel, im_before_c, im_c, im_after_c)


def _reference(im, im_after, im_before, model):
    """Pure-JAX reference of the same math (with explicit pad + crop)."""
    im_after = im_after[3:-3]
    im_before = im_before[3:-3]
    m = model.unimatch_multiple
    Huni, Wuni, _ = im_before.shape
    padw = (m - Wuni % m) % m
    padh = (m - Huni % m) % m
    pads = [jnp.pad(x, ((0, padh), (0, padw), (0, 0)), mode="symmetric")
            for x in (im_before, im, im_after)]

    def pf(a, b):
        Hc = min(a.shape[0], b.shape[0]); Wc = min(a.shape[1], b.shape[1])
        x = jnp.concatenate([a[:Hc, :Wc], b[:Hc, :Wc]], -1)
        fl = x @ model.w + model.b                    # (Hc, Wc, 2)
        return fl.transpose(2, 0, 1)[:, :Huni, :Wuni]

    f = pf(pads[1], pads[2])
    bck = pf(pads[0], pads[1])
    flow = jnp.stack([f[None], bck[None]], 0)         # [2,1,2,H,W]
    sos = jnp.sqrt(jnp.sum(flow ** 2, axis=2, keepdims=True))
    return jnp.mean(sos, axis=0)


if __name__ == "__main__":
    key = jax.random.PRNGKey(0)
    k_im, k_af, k_bf, k_model = jax.random.split(key, 4)

    Hori, Wori, C = 22, 120, 3       # small synthetic shapes (HWC)
    im = jax.random.uniform(k_im, (Hori, Wori, C), jnp.float32)
    im_after = jax.random.uniform(k_af, (Hori, Wori, C), jnp.float32)
    im_before = jax.random.uniform(k_bf, (Hori, Wori, C), jnp.float32)

    model = UnimatchPallas(k_model, channels=C, unimatch_multiple=8)

    mean_flow = model(im, im_after, im_before)
    mean_flow = jax.block_until_ready(mean_flow)

    ref = _reference(im, im_after, im_before, model)
    assert mean_flow.shape == ref.shape == (1, 1, Hori - 6, Wori)
    assert jnp.allclose(mean_flow, ref, atol=1e-5, rtol=1e-5)

    print("KERNEL_OK")
</pallas_src>

<mosaic_0001>
module attributes {stable_mosaic.version = 11 : i64} {
  func.func @kernel(%arg0: i32, %arg1: memref<3x16x128xf32, #tpu.memory_space<vmem>>, %arg2: memref<3x16x128xf32, #tpu.memory_space<vmem>>, %arg3: memref<3x16x128xf32, #tpu.memory_space<vmem>>, %arg4: memref<16x128xf32, #tpu.memory_space<vmem>>) attributes {dimension_semantics = [#tpu.dimension_semantics<parallel>], iteration_bounds = array<i64: 1>, scalar_prefetch = 0 : i64, scratch_operands = 0 : i64, tpu.core_type = #tpu.core_type<tc>, window_params = [{transform_indices = @transform_0, window_bounds = array<i64: 3, 16, 128>}, {transform_indices = @transform_1, window_bounds = array<i64: 3, 16, 128>}, {transform_indices = @transform_2, window_bounds = array<i64: 3, 16, 128>}, {transform_indices = @transform_3, window_bounds = array<i64: 16, 128>}]} {
    %c0 = arith.constant 0 : index
    %c0_0 = arith.constant 0 : index
    %c0_1 = arith.constant 0 : index
    %0 = vector.load %arg1[%c0, %c0_0, %c0_1] : memref<3x16x128xf32, #tpu.memory_space<vmem>>, vector<3x16x128xf32>
    %c0_2 = arith.constant 0 : index
    %c0_3 = arith.constant 0 : index
    %c0_4 = arith.constant 0 : index
    %1 = vector.load %arg2[%c0_2, %c0_3, %c0_4] : memref<3x16x128xf32, #tpu.memory_space<vmem>>, vector<3x16x128xf32>
    %c0_5 = arith.constant 0 : index
    %c0_6 = arith.constant 0 : index
    %c0_7 = arith.constant 0 : index
    %2 = vector.load %arg3[%c0_5, %c0_6, %c0_7] : memref<3x16x128xf32, #tpu.memory_space<vmem>>, vector<3x16x128xf32>
    %cst = arith.constant 0.0103223287 : f32
    %3 = vector.broadcast %cst : f32 to vector<16x128xf32>
    %cst_8 = arith.constant 0.0014994886 : f32
    %4 = vector.broadcast %cst_8 : f32 to vector<16x128xf32>
    %cst_9 = arith.constant 0.0103223287 : f32
    %5 = vector.broadcast %cst_9 : f32 to vector<16x128xf32>
    %cst_10 = arith.constant 0.0014994886 : f32
    %6 = vector.broadcast %cst_10 : f32 to vector<16x128xf32>
    %7 = vector.extract_strided_slice %1 {offsets = [0, 0, 0], sizes = [1, 16, 128], strides = [1, 1, 1]} : vector<3x16x128xf32> to vector<1x16x128xf32>
    %8 = vector.shape_cast %7 : vector<1x16x128xf32> to vector<16x128xf32>
    %cst_11 = arith.constant 0.168182179 : f32
    %9 = vector.broadcast %cst_11 : f32 to vector<16x128xf32>
    %10 = arith.mulf %9, %8 : vector<16x128xf32>
    %11 = arith.addf %3, %10 : vector<16x128xf32>
    %12 = vector.extract_strided_slice %2 {offsets = [0, 0, 0], sizes = [1, 16, 128], strides = [1, 1, 1]} : vector<3x16x128xf32> to vector<1x16x128xf32>
    %13 = vector.shape_cast %12 : vector<1x16x128xf32> to vector<16x128xf32>
    %cst_12 = arith.constant 0.0785198807 : f32
    %14 = vector.broadcast %cst_12 : f32 to vector<16x128xf32>
    %15 = arith.mulf %14, %13 : vector<16x128xf32>
    %16 = arith.addf %11, %15 : vector<16x128xf32>
    %17 = vector.extract_strided_slice %1 {offsets = [0, 0, 0], sizes = [1, 16, 128], strides = [1, 1, 1]} : vector<3x16x128xf32> to vector<1x16x128xf32>
    %18 = vector.shape_cast %17 : vector<1x16x128xf32> to vector<16x128xf32>
    %cst_13 = arith.constant 0.0665900484 : f32
    %19 = vector.broadcast %cst_13 : f32 to vector<16x128xf32>
    %20 = arith.mulf %19, %18 : vector<16x128xf32>
    %21 = arith.addf %4, %20 : vector<16x128xf32>
    %22 = vector.extract_strided_slice %2 {offsets = [0, 0, 0], sizes = [1, 16, 128], strides = [1, 1, 1]} : vector<3x16x128xf32> to vector<1x16x128xf32>
    %23 = vector.shape_cast %22 : vector<1x16x128xf32> to vector<16x128xf32>
    %cst_14 = arith.constant -0.144567892 : f32
    %24 = vector.broadcast %cst_14 : f32 to vector<16x128xf32>
    %25 = arith.mulf %24, %23 : vector<16x128xf32>
    %26 = arith.addf %21, %25 : vector<16x128xf32>
    %27 = vector.extract_strided_slice %0 {offsets = [0, 0, 0], sizes = [1, 16, 128], strides = [1, 1, 1]} : vector<3x16x128xf32> to vector<1x16x128xf32>
    %28 = vector.shape_cast %27 : vector<1x16x128xf32> to vector<16x128xf32>
    %cst_15 = arith.constant 0.168182179 : f32
    %29 = vector.broadcast %cst_15 : f32 to vector<16x128xf32>
    %30 = arith.mulf %29, %28 : vector<16x128xf32>
    %31 = arith.addf %5, %30 : vector<16x128xf32>
    %32 = vector.extract_strided_slice %1 {offsets = [0, 0, 0], sizes = [1, 16, 128], strides = [1, 1, 1]} : vector<3x16x128xf32> to vector<1x16x128xf32>
    %33 = vector.shape_cast %32 : vector<1x16x128xf32> to vector<16x128xf32>
    %cst_16 = arith.constant 0.0785198807 : f32
    %34 = vector.broadcast %cst_16 : f32 to vector<16x128xf32>
    %35 = arith.mulf %34, %33 : vector<16x128xf32>
    %36 = arith.addf %31, %35 : vector<16x128xf32>
    %37 = vector.extract_strided_slice %0 {offsets = [0, 0, 0], sizes = [1, 16, 128], strides = [1, 1, 1]} : vector<3x16x128xf32> to vector<1x16x128xf32>
    %38 = vector.shape_cast %37 : vector<1x16x128xf32> to vector<16x128xf32>
    %cst_17 = arith.constant 0.0665900484 : f32
    %39 = vector.broadcast %cst_17 : f32 to vector<16x128xf32>
    %40 = arith.mulf %39, %38 : vector<16x128xf32>
    %41 = arith.addf %6, %40 : vector<16x128xf32>
    %42 = vector.extract_strided_slice %1 {offsets = [0, 0, 0], sizes = [1, 16, 128], strides = [1, 1, 1]} : vector<3x16x128xf32> to vector<1x16x128xf32>
    %43 = vector.shape_cast %42 : vector<1x16x128xf32> to vector<16x128xf32>
    %cst_18 = arith.constant -0.144567892 : f32
    %44 = vector.broadcast %cst_18 : f32 to vector<16x128xf32>
    %45 = arith.mulf %44, %43 : vector<16x128xf32>
    %46 = arith.addf %41, %45 : vector<16x128xf32>
    %47 = vector.extract_strided_slice %1 {offsets = [1, 0, 0], sizes = [1, 16, 128], strides = [1, 1, 1]} : vector<3x16x128xf32> to vector<1x16x128xf32>
    %48 = vector.shape_cast %47 : vector<1x16x128xf32> to vector<16x128xf32>
    %cst_19 = arith.constant -0.0203993339 : f32
    %49 = vector.broadcast %cst_19 : f32 to vector<16x128xf32>
    %50 = arith.mulf %49, %48 : vector<16x128xf32>
    %51 = arith.addf %16, %50 : vector<16x128xf32>
    %52 = vector.extract_strided_slice %2 {offsets = [1, 0, 0], sizes = [1, 16, 128], strides = [1, 1, 1]} : vector<3x16x128xf32> to vector<1x16x128xf32>
    %53 = vector.shape_cast %52 : vector<1x16x128xf32> to vector<16x128xf32>
    %cst_20 = arith.constant 0.0208093282 : f32
    %54 = vector.broadcast %cst_20 : f32 to vector<16x128xf32>
    %55 = arith.mulf %54, %53 : vector<16x128xf32>
    %56 = arith.addf %51, %55 : vector<16x128xf32>
    %57 = vector.extract_strided_slice %1 {offsets = [1, 0, 0], sizes = [1, 16, 128], strides = [1, 1, 1]} : vector<3x16x128xf32> to vector<1x16x128xf32>
    %58 = vector.shape_cast %57 : vector<1x16x128xf32> to vector<16x128xf32>
    %cst_21 = arith.constant 0.0842891932 : f32
    %59 = vector.broadcast %cst_21 : f32 to vector<16x128xf32>
    %60 = arith.mulf %59, %58 : vector<16x128xf32>
    %61 = arith.addf %26, %60 : vector<16x128xf32>
    %62 = vector.extract_strided_slice %2 {offsets = [1, 0, 0], sizes = [1, 16, 128], strides = [1, 1, 1]} : vector<3x16x128xf32> to vector<1x16x128xf32>
    %63 = vector.shape_cast %62 : vector<1x16x128xf32> to vector<16x128xf32>
    %cst_22 = arith.constant 0.0643632263 : f32
    %64 = vector.broadcast %cst_22 : f32 to vector<16x128xf32>
    %65 = arith.mulf %64, %63 : vector<16x128xf32>
    %66 = arith.addf %61, %65 : vector<16x128xf32>
    %67 = vector.extract_strided_slice %0 {offsets = [1, 0, 0], sizes = [1, 16, 128], strides = [1, 1, 1]} : vector<3x16x128xf32> to vector<1x16x128xf32>
    %68 = vector.shape_cast %67 : vector<1x16x128xf32> to vector<16x128xf32>
    %cst_23 = arith.constant -0.0203993339 : f32
    %69 = vector.broadcast %cst_23 : f32 to vector<16x128xf32>
    %70 = arith.mulf %69, %68 : vector<16x128xf32>
    %71 = arith.addf %36, %70 : vector<16x128xf32>
    %72 = vector.extract_strided_slice %1 {offsets = [1, 0, 0], sizes = [1, 16, 128], strides = [1, 1, 1]} : vector<3x16x128xf32> to vector<1x16x128xf32>
    %73 = vector.shape_cast %72 : vector<1x16x128xf32> to vector<16x128xf32>
    %cst_24 = arith.constant 0.0208093282 : f32
    %74 = vector.broadcast %cst_24 : f32 to vector<16x128xf32>
    %75 = arith.mulf %74, %73 : vector<16x128xf32>
    %76 = arith.addf %71, %75 : vector<16x128xf32>
    %77 = vector.extract_strided_slice %0 {offsets = [1, 0, 0], sizes = [1, 16, 128], strides = [1, 1, 1]} : vector<3x16x128xf32> to vector<1x16x128xf32>
    %78 = vector.shape_cast %77 : vector<1x16x128xf32> to vector<16x128xf32>
    %cst_25 = arith.constant 0.0842891932 : f32
    %79 = vector.broadcast %cst_25 : f32 to vector<16x128xf32>
    %80 = arith.mulf %79, %78 : vector<16x128xf32>
    %81 = arith.addf %46, %80 : vector<16x128xf32>
    %82 = vector.extract_strided_slice %1 {offsets = [1, 0, 0], sizes = [1, 16, 128], strides = [1, 1, 1]} : vector<3x16x128xf32> to vector<1x16x128xf32>
    %83 = vector.shape_cast %82 : vector<1x16x128xf32> to vector<16x128xf32>
    %cst_26 = arith.constant 0.0643632263 : f32
    %84 = vector.broadcast %cst_26 : f32 to vector<16x128xf32>
    %85 = arith.mulf %84, %83 : vector<16x128xf32>
    %86 = arith.addf %81, %85 : vector<16x128xf32>
    %87 = vector.extract_strided_slice %1 {offsets = [2, 0, 0], sizes = [1, 16, 128], strides = [1, 1, 1]} : vector<3x16x128xf32> to vector<1x16x128xf32>
    %88 = vector.shape_cast %87 : vector<1x16x128xf32> to vector<16x128xf32>
    %cst_27 = arith.constant 0.148106754 : f32
    %89 = vector.broadcast %cst_27 : f32 to vector<16x128xf32>
    %90 = arith.mulf %89, %88 : vector<16x128xf32>
    %91 = arith.addf %56, %90 : vector<16x128xf32>
    %92 = vector.extract_strided_slice %2 {offsets = [2, 0, 0], sizes = [1, 16, 128], strides = [1, 1, 1]} : vector<3x16x128xf32> to vector<1x16x128xf32>
    %93 = vector.shape_cast %92 : vector<1x16x128xf32> to vector<16x128xf32>
    %cst_28 = arith.constant 0.134067968 : f32
    %94 = vector.broadcast %cst_28 : f32 to vector<16x128xf32>
    %95 = arith.mulf %94, %93 : vector<16x128xf32>
    %96 = arith.addf %91, %95 : vector<16x128xf32>
    %97 = vector.extract_strided_slice %1 {offsets = [2, 0, 0], sizes = [1, 16, 128], strides = [1, 1, 1]} : vector<3x16x128xf32> to vector<1x16x128xf32>
    %98 = vector.shape_cast %97 : vector<1x16x128xf32> to vector<16x128xf32>
    %cst_29 = arith.constant 0.187132359 : f32
    %99 = vector.broadcast %cst_29 : f32 to vector<16x128xf32>
    %100 = arith.mulf %99, %98 : vector<16x128xf32>
    %101 = arith.addf %66, %100 : vector<16x128xf32>
    %102 = vector.extract_strided_slice %2 {offsets = [2, 0, 0], sizes = [1, 16, 128], strides = [1, 1, 1]} : vector<3x16x128xf32> to vector<1x16x128xf32>
    %103 = vector.shape_cast %102 : vector<1x16x128xf32> to vector<16x128xf32>
    %cst_30 = arith.constant -0.0944908782 : f32
    %104 = vector.broadcast %cst_30 : f32 to vector<16x128xf32>
    %105 = arith.mulf %104, %103 : vector<16x128xf32>
    %106 = arith.addf %101, %105 : vector<16x128xf32>
    %107 = vector.extract_strided_slice %0 {offsets = [2, 0, 0], sizes = [1, 16, 128], strides = [1, 1, 1]} : vector<3x16x128xf32> to vector<1x16x128xf32>
    %108 = vector.shape_cast %107 : vector<1x16x128xf32> to vector<16x128xf32>
    %cst_31 = arith.constant 0.148106754 : f32
    %109 = vector.broadcast %cst_31 : f32 to vector<16x128xf32>
    %110 = arith.mulf %109, %108 : vector<16x128xf32>
    %111 = arith.addf %76, %110 : vector<16x128xf32>
    %112 = vector.extract_strided_slice %1 {offsets = [2, 0, 0], sizes = [1, 16, 128], strides = [1, 1, 1]} : vector<3x16x128xf32> to vector<1x16x128xf32>
    %113 = vector.shape_cast %112 : vector<1x16x128xf32> to vector<16x128xf32>
    %cst_32 = arith.constant 0.134067968 : f32
    %114 = vector.broadcast %cst_32 : f32 to vector<16x128xf32>
    %115 = arith.mulf %114, %113 : vector<16x128xf32>
    %116 = arith.addf %111, %115 : vector<16x128xf32>
    %117 = vector.extract_strided_slice %0 {offsets = [2, 0, 0], sizes = [1, 16, 128], strides = [1, 1, 1]} : vector<3x16x128xf32> to vector<1x16x128xf32>
    %118 = vector.shape_cast %117 : vector<1x16x128xf32> to vector<16x128xf32>
    %cst_33 = arith.constant 0.187132359 : f32
    %119 = vector.broadcast %cst_33 : f32 to vector<16x128xf32>
    %120 = arith.mulf %119, %118 : vector<16x128xf32>
    %121 = arith.addf %86, %120 : vector<16x128xf32>
    %122 = vector.extract_strided_slice %1 {offsets = [2, 0, 0], sizes = [1, 16, 128], strides = [1, 1, 1]} : vector<3x16x128xf32> to vector<1x16x128xf32>
    %123 = vector.shape_cast %122 : vector<1x16x128xf32> to vector<16x128xf32>
    %cst_34 = arith.constant -0.0944908782 : f32
    %124 = vector.broadcast %cst_34 : f32 to vector<16x128xf32>
    %125 = arith.mulf %124, %123 : vector<16x128xf32>
    %126 = arith.addf %121, %125 : vector<16x128xf32>
    %127 = arith.mulf %96, %96 : vector<16x128xf32>
    %128 = arith.mulf %106, %106 : vector<16x128xf32>
    %129 = arith.addf %127, %128 : vector<16x128xf32>
    %130 = math.sqrt %129 : vector<16x128xf32>
    %131 = arith.mulf %116, %116 : vector<16x128xf32>
    %132 = arith.mulf %126, %126 : vector<16x128xf32>
    %133 = arith.addf %131, %132 : vector<16x128xf32>
    %134 = math.sqrt %133 : vector<16x128xf32>
    %135 = arith.addf %130, %134 : vector<16x128xf32>
    %cst_35 = arith.constant 5.000000e-01 : f32
    %136 = vector.broadcast %cst_35 : f32 to vector<16x128xf32>
    %137 = arith.mulf %136, %135 : vector<16x128xf32>
    %c0_36 = arith.constant 0 : index
    %c0_37 = arith.constant 0 : index
    %138 = vector.load %arg4[%c0_36, %c0_37] : memref<16x128xf32, #tpu.memory_space<vmem>>, vector<16x128xf32>
    tpu.vector_store %arg4[%c0_36, %c0_37], %137 {strides = array<i32>} : memref<16x128xf32, #tpu.memory_space<vmem>>, vector<16x128xf32>,
    return
  }
  func.func @transform_0(%arg0: i32) -> (i32, i32, i32) {
    %c0_i32 = arith.constant 0 : i32
    %c0_i32_0 = arith.constant 0 : i32
    %c0_i32_1 = arith.constant 0 : i32
    return %c0_i32, %arg0, %c0_i32_0 : i32, i32, i32
  }
  func.func @transform_1(%arg0: i32) -> (i32, i32, i32) {
    %c0_i32 = arith.constant 0 : i32
    %c0_i32_0 = arith.constant 0 : i32
    %c0_i32_1 = arith.constant 0 : i32
    return %c0_i32, %arg0, %c0_i32_0 : i32, i32, i32
  }
  func.func @transform_2(%arg0: i32) -> (i32, i32, i32) {
    %c0_i32 = arith.constant 0 : i32
    %c0_i32_0 = arith.constant 0 : i32
    %c0_i32_1 = arith.constant 0 : i32
    return %c0_i32, %arg0, %c0_i32_0 : i32, i32, i32
  }
  func.func @transform_3(%arg0: i32) -> (i32, i32) {
    %c0_i32 = arith.constant 0 : i32
    %c0_i32_0 = arith.constant 0 : i32
    return %arg0, %c0_i32 : i32, i32
  }
}

</mosaic_0001>

<bundles_post_ra>
// kernel: tpu_custom_call.1
= control target key start
LH: loop header
LB: loop body
LE: loop exit
PB: predicated region body
PF: predicated region fallthrough
CT: control target
= control target key end

     0   :  { %8 = vsyncpa [#allocation3], 0  ;;  %s443_s0 = inlined_call_operand.hbm [shape: f32[3,16,128], index: 0, kind: input, shape index: {}]   ;;  %s444_s1 = inlined_call_operand.hbm [shape: f32[3,16,128], index: 1, kind: input, shape index: {}]   ;;  %s445_s2 = inlined_call_operand.hbm [shape: f32[3,16,128], index: 2, kind: input, shape index: {}]   ;;  %s446_s3 = inlined_call_operand.hbm [shape: f32[16,128], index: 3, kind: output, shape index: {}]  }
   0x1   :  { %9 = vsyncpa [#allocation6], 0 }
   0x2   :  { %10 = vsyncpa [#allocation4], 0  ;;  %s342_s12 = smov [#allocation5]   ;;  %s343_s14 = smov [#allocation2]  }
   0x3   :  { %s28_s13 = sshll.u32 %s342_s12, 4  ;;  %s16_s15 = sshll.u32 %s343_s14, 4  ;;  %s29_s13 = int_to_ptr.vmem [resolvable:$true] %s28_s13  ;;  %s368_s15 = int_to_ptr.vmem [resolvable:$true] %s16_s15 }
   0x4   :  { %s248_s18 = scalar_lea.hbm %s444_s1, 768 }
   0x5   :  { %p249_p0 = scmp.ne.s32.totalorder %s444_s1, %s248_s18  ;;  %p252_p1 = scmp.lt.u32.totalorder %s248_s18, %s444_s1 }
   0x7   :  { %p254_p2 = pnand %p252_p1, %p249_p0 }
   0x9   :  { %257 = shalt.err (!%p254_p2)
}
   0xa   :  { %s258_s23 = scalar_lea.vmem %s29_s13, 768  ;;  %p263_p4 = scmp.lt.s32.totalorder %s29_s13, %s29_s13 }
   0xb   :  { %p259_p3 = scmp.ne.s32.totalorder %s29_s13, %s258_s23  ;;  %p264_p5 = scmp.lt.s32.totalorder %s258_s23, %s258_s23 }
   0xd   :  { %p265_p6 = por %p264_p5, %p263_p4 }
   0xf   :  { %p266_p7 = pnand %p265_p6, %p259_p3 }
  0x11   :  { %269 = shalt.err (!%p266_p7)
}
  0x12   :  { %s344_s24 = smov 128   ;;  %s345_s25 = smov 8  }
  0x13   :  { %34 = dma.hbm_to_vmem [thread:$0]  %s444_s1, 768, %s29_s13, [#allocation6], %s344_s24, %s344_s24, %s345_s25  }
  0x14   :  { %s270_s30 = scalar_lea.hbm %s443_s0, 768 }
  0x15   :  { %p271_p8 = scmp.ne.s32.totalorder %s443_s0, %s270_s30  ;;  %p274_p9 = scmp.lt.u32.totalorder %s270_s30, %s443_s0 }
  0x17   :  { %p276_p10 = pnand %p274_p9, %p271_p8 }
  0x19   :  { %279 = shalt.err (!%p276_p10)
}
  0x1a   :  { %s280_s8 = scalar_lea.vmem %s368_s15, 768  ;;  %p285_p12 = scmp.lt.s32.totalorder %s368_s15, %s368_s15 }
  0x1b   :  { %p281_p11 = scmp.ne.s32.totalorder %s368_s15, %s280_s8  ;;  %p286_p13 = scmp.lt.s32.totalorder %s280_s8, %s280_s8 }
  0x1d   :  { %p287_p0 = por %p286_p13, %p285_p12 }
  0x1f   :  { %p288_p1 = pnand %p287_p0, %p281_p11 }
  0x21   :  { %291 = shalt.err (!%p288_p1)
}
  0x22   :  { %22 = dma.hbm_to_vmem [thread:$0]  %s443_s0, 768, %s368_s15, [#allocation3], %s344_s24, %s344_s24, %s345_s25  }
  0x23   :  { %s346_s10 = smov [#allocation7]   ;;  %s292_s14 = scalar_lea.hbm %s445_s2, 768 }
  0x24   :  { %s40_s11 = sshll.u32 %s346_s10, 4  ;;  %p293_p2 = scmp.ne.s32.totalorder %s445_s2, %s292_s14  ;;  %s41_s11 = int_to_ptr.vmem [resolvable:$true] %s40_s11 }
  0x25   :  { %p296_p3 = scmp.lt.u32.totalorder %s292_s14, %s445_s2 }
  0x27   :  { %p298_p4 = pnand %p296_p3, %p293_p2 }
  0x29   :  { %301 = shalt.err (!%p298_p4)
}
  0x2a   :  { %s302_s20 = scalar_lea.vmem %s41_s11, 768  ;;  %p307_p6 = scmp.lt.s32.totalorder %s41_s11, %s41_s11 }
  0x2b   :  { %p303_p5 = scmp.ne.s32.totalorder %s41_s11, %s302_s20  ;;  %p308_p7 = scmp.lt.s32.totalorder %s302_s20, %s302_s20 }
  0x2d   :  { %p309_p8 = por %p308_p7, %p307_p6 }
  0x2f   :  { %p310_p9 = pnand %p309_p8, %p303_p5 }
  0x31   :  { %313 = shalt.err (!%p310_p9)
}
  0x32   :  { %46 = dma.hbm_to_vmem [thread:$0]  %s445_s2, 768, %s41_s11, [#allocation6], %s344_s24, %s344_s24, %s345_s25  }
  0x33   :  { %336 = dma.done.wait [#allocation3], 768  }
  0x34   :  { %337 = vsyncadd [#allocation3], 4294966528 }
  0x35   :  { %338 = dma.done.wait [#allocation6], 1536  }
  0x36   :  { %339 = vsyncadd [#allocation6], 4294965760  ;;  %v56_v0 = vld [vmem:[#allocation2] sm:$0xff]  ;;  %v62_v1 = vld [vmem:[#allocation5] sm:$0xff]  ;;  %s347_s2 = smov [#allocation8]  }
  0x37   :  { %v90_v2 = vmul.f32 0.16818218, %v56_v0  ;;  %v64_v3 = vld [vmem:[#allocation5 + $0x10] sm:$0xff]  ;;  %v70_v5 = vld [vmem:[#allocation7 + $0x10] sm:$0xff]  ;;  %v74_v6 = vmul.f32 0.16818218, %v62_v1 }
  0x38   :  { %v68_v4 = vld [vmem:[#allocation7] sm:$0xff]  ;;  %v58_v7 = vld [vmem:[#allocation2 + $0x10] sm:$0xff]  ;;  %v82_v9 = vmul.f32 0.06659005, %v62_v1  ;;  %v94_v13 = vmul.f32 0.07851988, %v62_v1 }
  0x39   :  { %v78_v8 = vmul.f32 0.07851988, %v68_v4  ;;  %v86_v10 = vmul.f32 -0.14456789, %v68_v4  ;;  %v76_v11 = vadd.f32 0.010322329, %v74_v6 }
  0x3a   :  { %v92_v12 = vadd.f32 0.010322329, %v90_v2  ;;  %v84_v14 = vadd.f32 0.0014994886, %v82_v9  ;;  %v98_v15 = vmul.f32 0.06659005, %v56_v0 }
  0x3b   :  { %v102_v16 = vmul.f32 -0.14456789, %v62_v1  ;;  %v60_v17 = vld [vmem:[#allocation2 + $0x20] sm:$0xff]  ;;  %v66_v18 = vld [vmem:[#allocation5 + $0x20] sm:$0xff]  ;;  %v80_v20 = vadd.f32 %v78_v8, %v76_v11  ;;  %v106_v22 = vmul.f32 -0.020399334, %v64_v3 }
  0x3c   :  { %v72_v19 = vld [vmem:[#allocation7 + $0x20] sm:$0xff]  ;;  %v96_v21 = vadd.f32 %v94_v13, %v92_v12  ;;  %v110_v23 = vmul.f32 0.020809328, %v70_v5  ;;  %v88_v24 = vadd.f32 %v86_v10, %v84_v14  ;;  %v100_v25 = vadd.f32 0.0014994886, %v98_v15  ;;  %v63_v40 = vld [vmem:[#allocation5 + $0x8] sm:$0xff] }
  0x3d   :  { %v114_v26 = vmul.f32 0.08428919, %v64_v3  ;;  %v118_v27 = vmul.f32 0.06436323, %v70_v5  ;;  %v108_v28 = vadd.f32 %v106_v22, %v80_v20  ;;  %v122_v29 = vmul.f32 -0.020399334, %v58_v7 }
  0x3e   :  { %v126_v30 = vmul.f32 0.020809328, %v64_v3  ;;  %v130_v31 = vmul.f32 0.08428919, %v58_v7  ;;  %v104_v32 = vadd.f32 %v102_v16, %v100_v25  ;;  %v134_v34 = vmul.f32 0.06436323, %v64_v3 }
  0x3f   :  { %v116_v33 = vadd.f32 %v114_v26, %v88_v24  ;;  %v138_v35 = vmul.f32 0.14810675, %v66_v18  ;;  %v112_v36 = vadd.f32 %v110_v23, %v108_v28  ;;  %v124_v37 = vadd.f32 %v122_v29, %v96_v21  ;;  %v69_v45 = vld [vmem:[#allocation7 + $0x8] sm:$0xff]  ;;  %v71_v9 = vld [vmem:[#allocation7 + $0x18] sm:$0xff]  ;;  %s221_s21 = sshll.u32 %s347_s2, 4  ;;  %s222_s21 = int_to_ptr.vmem [resolvable:$true] %s221_s21 }
  0x40   :  { %v142_v38 = vmul.f32 0.13406797, %v72_v19  ;;  %v146_v39 = vmul.f32 0.18713236, %v66_v18  ;;  %v132_v42 = vadd.f32 %v130_v31, %v104_v32  ;;  %v150_v43 = vmul.f32 -0.09449088, %v72_v19  ;;  %p319_p11 = scmp.lt.s32.totalorder %s222_s21, %s222_s21 }
  0x41   :  { %v120_v41 = vadd.f32 %v118_v27, %v116_v33  ;;  %v154_v44 = vmul.f32 0.14810675, %v60_v17  ;;  %v128_v46 = vadd.f32 %v126_v30, %v124_v37  ;;  %v140_v47 = vadd.f32 %v138_v35, %v112_v36  ;;  %v57_v53 = vld [vmem:[#allocation2 + $0x8] sm:$0xff]  ;;  %v67_v23 = vld [vmem:[#allocation5 + $0x28] sm:$0xff]  ;;  %s314_s22 = scalar_lea.vmem %s222_s21, 256 }
  0x42   :  { %v158_v48 = vmul.f32 0.13406797, %v66_v18  ;;  %v162_v49 = vmul.f32 0.18713236, %v60_v17  ;;  %v136_v50 = vadd.f32 %v134_v34, %v132_v42  ;;  %v166_v52 = vmul.f32 -0.09449088, %v66_v18  ;;  %p315_p10 = scmp.ne.s32.totalorder %s222_s21, %s314_s22  ;;  %p320_p12 = scmp.lt.s32.totalorder %s314_s22, %s314_s22 }
  0x43   :  { %v148_v51 = vadd.f32 %v146_v39, %v120_v41  ;;  %v75_v54 = vmul.f32 0.16818218, %v63_v40  ;;  %v144_v55 = vadd.f32 %v142_v38, %v140_v47  ;;  %v156_v56 = vadd.f32 %v154_v44, %v128_v46  ;;  %v65_v1 = vld [vmem:[#allocation5 + $0x18] sm:$0xff]  ;;  %v59_v17 = vld [vmem:[#allocation2 + $0x18] sm:$0xff] }
  0x44   :  { %v79_v57 = vmul.f32 0.07851988, %v69_v45  ;;  %v83_v58 = vmul.f32 0.06659005, %v63_v40  ;;  %v164_v60 = vadd.f32 %v162_v49, %v136_v50  ;;  %v87_v62 = vmul.f32 -0.14456789, %v69_v45  ;;  %p321_p13 = por %p320_p12, %p319_p11 }
  0x45   :  { %v152_v59 = vadd.f32 %v150_v43, %v148_v51  ;;  %v77_v61 = vadd.f32 0.010322329, %v75_v54  ;;  %v160_v63 = vadd.f32 %v158_v48, %v156_v56  ;;  %v170_v0 = vmul.f32 %v144_v55, %v144_v55  ;;  %v73_v24 = vld [vmem:[#allocation7 + $0x28] sm:$0xff] }
  0x46   :  { %v85_v2 = vadd.f32 0.0014994886, %v83_v58  ;;  %v91_v3 = vmul.f32 0.16818218, %v57_v53  ;;  %v168_v4 = vadd.f32 %v166_v52, %v164_v60  ;;  %v95_v7 = vmul.f32 0.07851988, %v63_v40  ;;  %p322_p0 = pnand %p321_p13, %p315_p10 }
  0x47   :  { %v172_v5 = vmul.f32 %v152_v59, %v152_v59  ;;  %v81_v6 = vadd.f32 %v79_v57, %v77_v61  ;;  %v190_v8 = vmul.f32 %v160_v63, %v160_v63  ;;  %v99_v12 = vmul.f32 0.06659005, %v57_v53  ;;  %v61_v31 = vld [vmem:[#allocation2 + $0x28] sm:$0xff] }
  0x48   :  { %v89_v10 = vadd.f32 %v87_v62, %v85_v2  ;;  %v93_v11 = vadd.f32 0.010322329, %v91_v3  ;;  %v192_v14 = vmul.f32 %v168_v4, %v168_v4  ;;  %v103_v15 = vmul.f32 -0.14456789, %v63_v40 }
  0x49   :  { %v420_v13 = vadd.f32 %v172_v5, %v170_v0  ;;  %v107_v16 = vmul.f32 -0.020399334, %v65_v1  ;;  %v101_v18 = vadd.f32 0.0014994886, %v99_v12  ;;  %v115_v19 = vmul.f32 0.08428919, %v65_v1 }
  0x4a   :  { %v97_v20 = vadd.f32 %v95_v7, %v93_v11  ;;  %v111_v21 = vmul.f32 0.020809328, %v71_v9  ;;  %v194_v22 = vadd.f32 %v192_v14, %v190_v8  ;;  %v119_v28 = vmul.f32 0.06436323, %v71_v9 }
  0x4b   :  { %240 = vrsqrt.f32 %v420_v13  ;;  %v109_v25 = vadd.f32 %v107_v16, %v81_v6  ;;  %v117_v26 = vadd.f32 %v115_v19, %v89_v10  ;;  %v105_v27 = vadd.f32 %v103_v15, %v101_v18 }
  0x4c   :  { %v123_v29 = vmul.f32 -0.020399334, %v59_v17  ;;  %v127_v30 = vmul.f32 0.020809328, %v65_v1  ;;  %242 = vrsqrt.f32 %v194_v22  ;;  %v131_v35 = vmul.f32 0.08428919, %v59_v17 }
  0x4d   :  { %v113_v32 = vadd.f32 %v111_v21, %v109_v25  ;;  %v121_v33 = vadd.f32 %v119_v28, %v117_v26  ;;  %v135_v36 = vmul.f32 0.06436323, %v65_v1  ;;  %v139_v37 = vmul.f32 0.14810675, %v67_v23 }
  0x4e   :  { %v125_v34 = vadd.f32 %v123_v29, %v97_v20  ;;  %v143_v38 = vmul.f32 0.13406797, %v73_v24  ;;  %v133_v40 = vadd.f32 %v131_v35, %v105_v27  ;;  %v147_v41 = vmul.f32 0.18713236, %v67_v23 }
  0x4f   :  { %v151_v42 = vmul.f32 -0.09449088, %v73_v24  ;;  %v141_v43 = vadd.f32 %v139_v37, %v113_v32  ;;  %v155_v44 = vmul.f32 0.14810675, %v61_v31  ;;  %v159_v45 = vmul.f32 0.13406797, %v67_v23 }
  0x50   :  { %v129_v39 = vadd.f32 %v127_v30, %v125_v34  ;;  %v163_v46 = vmul.f32 0.18713236, %v61_v31  ;;  %v137_v47 = vadd.f32 %v135_v36, %v133_v40  ;;  %v149_v48 = vadd.f32 %v147_v41, %v121_v33 }
  0x51   :  { %v167_v49 = vmul.f32 -0.09449088, %v67_v23  ;;  %v145_v50 = vadd.f32 %v143_v38, %v141_v43  ;;  %vm178_vm0 = vcmp.eq.f32.partialorder %v420_v13, inf  ;;  %v181_v56 = vand.u32 2147483648, %v420_v13 }
  0x52   :  { %v157_v51 = vadd.f32 %v155_v44, %v129_v39  ;;  %v153_v53 = vadd.f32 %v151_v42, %v149_v48  ;;  %v165_v54 = vadd.f32 %v163_v46, %v137_v47  ;;  %vm180_vm1 = vcmp.eq.f32.partialorder %v420_v13, 0.0 }
  0x53   :  { %v171_v58 = vmul.f32 %v145_v50, %v145_v50  ;;  %vm198_vm2 = vcmp.eq.f32.partialorder %v194_v22, inf  ;;  %v201_v63 = vand.u32 2147483648, %v194_v22  ;;  %vm200_vm3 = vcmp.eq.f32.partialorder %v194_v22, 0.0 }
  0x54   :  { %v161_v57 = vadd.f32 %v159_v45, %v157_v51  ;;  %v169_v59 = vadd.f32 %v167_v49, %v165_v54  ;;  %v173_v60 = vmul.f32 %v153_v53, %v153_v53 }
  0x55   :  { %v241_v52 = vpop.eup %240 }
  0x56   :  { %v177_v55 = vmul.f32 %v241_v52, %v420_v13  ;;  %v243_v61 = vpop.eup %242  ;;  %v191_v0 = vmul.f32 %v161_v57, %v161_v57  ;;  %v175_v2 = vadd.f32 %v173_v60, %v171_v58  ;;  %v193_v3 = vmul.f32 %v169_v59, %v169_v59 }
  0x57   :  { %v197_v1 = vmul.f32 %v243_v61, %v194_v22 }
  0x58   :  { %v179_v62 = vsel %vm178_vm0, %v420_v13, %v177_v55  ;;  %244 = vrsqrt.f32 %v175_v2  ;;  %v195_v7 = vadd.f32 %v193_v3, %v191_v0  ;;  %vm185_vm4 = vcmp.eq.f32.partialorder %v175_v2, inf }
  0x59   :  { %v182_v4 = vsel %vm180_vm1, %v181_v56, %v179_v62  ;;  %v199_v5 = vsel %vm198_vm2, %v194_v22, %v197_v1  ;;  %v188_v12 = vand.u32 2147483648, %v175_v2  ;;  %vm187_vm5 = vcmp.eq.f32.partialorder %v175_v2, 0.0 }
  0x5a   :  { %v202_v6 = vsel %vm200_vm3, %v201_v63, %v199_v5  ;;  %246 = vrsqrt.f32 %v195_v7  ;;  %vm205_vm6 = vcmp.eq.f32.partialorder %v195_v7, inf  ;;  %v208_v15 = vand.u32 2147483648, %v195_v7 }
  0x5b   :  { %v210_v8 = vadd.f32 %v202_v6, %v182_v4  ;;  %vm207_vm7 = vcmp.eq.f32.partialorder %v195_v7, 0.0 }
  0x5d   :  { %v212_v9 = vmul.f32 0.5, %v210_v8 }
  0x5f   :  { %214 = vst [vmem:[#allocation8] sm:$0xff] %v212_v9 }
  0x62   :  { %v245_v10 = vpop.eup %244 }
  0x63   :  { %v184_v11 = vmul.f32 %v245_v10, %v175_v2 }
  0x64   :  { %v247_v13 = vpop.eup %246 }
  0x65   :  { %v186_v14 = vsel %vm185_vm4, %v175_v2, %v184_v11  ;;  %v204_v16 = vmul.f32 %v247_v13, %v195_v7 }
  0x66   :  { %v189_v17 = vsel %vm187_vm5, %v188_v12, %v186_v14 }
  0x67   :  { %v206_v18 = vsel %vm205_vm6, %v195_v7, %v204_v16 }
  0x68   :  { %v209_v19 = vsel %vm207_vm7, %v208_v15, %v206_v18 }
  0x69   :  { %v211_v20 = vadd.f32 %v209_v19, %v189_v17 }
  0x6b   :  { %v213_v21 = vmul.f32 0.5, %v211_v20 }
  0x6d   :  { %215 = vst [vmem:[#allocation8 + $0x8] sm:$0xff] %v213_v21 }
  0x6e   :  { %325 = shalt.err (!%p322_p0)
}
  0x6f   :  { %s326_s27 = scalar_lea.hbm %s446_s3, 256 }
  0x70   :  { %p327_p1 = scmp.ne.s32.totalorder %s446_s3, %s326_s27  ;;  %p330_p2 = scmp.lt.u32.totalorder %s326_s27, %s446_s3 }
  0x72   :  { %p332_p3 = pnand %p330_p2, %p327_p1 }
  0x74   :  { %335 = shalt.err (!%p332_p3)
}
  0x75   :  { %227 = dma.vmem_to_hbm [thread:$0]  %s222_s21, 256, %s446_s3, [#allocation4], %s344_s24, %s344_s24, %s345_s25  }
  0x76   :  { %340 = dma.done.wait [#allocation4], 256  }
  0x77   :  { %341 = vsyncadd [#allocation4], 4294967040 }
  0x78   :  { %231 = vsyncpa [#allocation3], 1 }
  0x79   :  { %232 = vsyncpa [#allocation6], 1 }
  0x7a   :  { %233 = vsyncpa [#allocation4], 1 }

</bundles_post_ra>
